<compile_context>
chip_gen: v6e
topology: v6e:2x2x1
jax: 0.10.0
libtpu: 0.0.40
codegen_flags: <defaults>
</compile_context>

<pallas_src>
import jax
import jax.numpy as jnp
from jax.experimental import pallas as pl
from jax.experimental.pallas import tpu as pltpu

HIDDEN = 64
_TB_DEFAULT = 2048  # batch tile (columns of the feature-major block); multiple of 128


def _round_up(x, m):
    return ((x + m - 1) // m) * m


def _orthogonal(key, shape, gain):
    """Deterministic orthogonal init (analog of nn.init.orthogonal_)."""
    out_f, in_f = shape  # PyTorch weight shape: (out_features, in_features)
    n_rows, n_cols = max(out_f, in_f), min(out_f, in_f)
    a = jax.random.normal(key, (n_rows, n_cols), dtype=jnp.float32)
    q, r = jnp.linalg.qr(a)
    q = q * jnp.sign(jnp.diag(r))  # make decomposition unique
    if out_f < in_f:
        q = q.T
    return gain * q[:out_f, :in_f]


def make_critic_params(in_dim, key):
    """PyTorch-layout weights: fc1 (64, in_dim), fc2 (64, 64), value_out (1, 64); biases 0."""
    k1, k2, k3 = jax.random.split(key, 3)
    w1 = _orthogonal(k1, (HIDDEN, in_dim), gain=jnp.sqrt(2.0)).astype(jnp.float32)
    w2 = _orthogonal(k2, (HIDDEN, HIDDEN), gain=jnp.sqrt(2.0)).astype(jnp.float32)
    w3 = _orthogonal(k3, (1, HIDDEN), gain=1.0).astype(jnp.float32)
    return dict(
        w1=w1,                                   # (64, in_dim): kernel computes W1 @ xT
        w2=w2,                                   # (64, 64)
        w3=w3,                                   # (1, 64)
        b1=jnp.zeros((HIDDEN, 1), jnp.float32),  # column bias, broadcast over TB lanes
        b2=jnp.zeros((HIDDEN, 1), jnp.float32),
        b3=jnp.zeros((1,), jnp.float32),         # scalar bias -> SMEM
    )


def critic_kernel(x_ref, w1_ref, b1_ref, w2_ref, b2_ref, w3_ref, b3_ref, out_ref):
    # All activations are feature-major: (64, TB) / (1, TB) -> lane-dense vregs.
    h = jnp.tanh(
        jnp.dot(w1_ref[...], x_ref[...], preferred_element_type=jnp.float32)
        + b1_ref[...]
    )
    h = jnp.tanh(
        jnp.dot(w2_ref[...], h, preferred_element_type=jnp.float32) + b2_ref[...]
    )
    v = jnp.dot(w3_ref[...], h, preferred_element_type=jnp.float32)
    out_ref[...] = v + b3_ref[0]   # single unmasked (1, TB) row store


def _choose_tiling(batch, tb_max):
    """Pad batch to a multiple of 128 and pick a lane-dense tile size.

    Prefers >= 2 tiles (so the "parallel" grid axis can use both v7x TensorCores)
    while capping each tile at tb_max columns. On single-TC chips the extra grid
    step costs ~0.35 us, i.e. noise.
    """
    padded = _round_up(max(batch, 1), 128)
    if padded <= 128:
        return padded, padded, 1
    num_tiles = max(2, pl.cdiv(padded, tb_max))
    tb = _round_up(pl.cdiv(padded, num_tiles), 128)
    padded = num_tiles * tb
    return padded, tb, num_tiles


def critic_forward(state, params, tb_max=_TB_DEFAULT):
    """state: (batch, in_dim) float32 -> value: (batch, 1) float32."""
    assert tb_max % 128 == 0, "tb_max must be a multiple of 128 (lane-dense tiles)"
    batch, in_dim = state.shape
    padded, tb, num_tiles = _choose_tiling(batch, tb_max)

    # One XLA transpose outside the kernel: feature-major (in_dim, padded) input.
    xT = state.T
    if padded != batch:
        xT = jnp.pad(xT, ((0, 0), (0, padded - batch)))

    w1, b1 = params["w1"], params["b1"]
    w2, b2 = params["w2"], params["b2"]
    w3, b3 = params["w3"], params["b3"]

    in_specs = [
        pl.BlockSpec((in_dim, tb), lambda i: (0, i)),       # state columns, tiled over grid
        pl.BlockSpec(w1.shape, lambda i: (0, 0)),           # weights/biases: constant index
        pl.BlockSpec(b1.shape, lambda i: (0, 0)),           #  -> DMA'd once, VMEM-resident
        pl.BlockSpec(w2.shape, lambda i: (0, 0)),
        pl.BlockSpec(b2.shape, lambda i: (0, 0)),
        pl.BlockSpec(w3.shape, lambda i: (0, 0)),
        pl.BlockSpec(memory_space=pltpu.MemorySpace.SMEM),  # scalar b3
    ]
    out_spec = pl.BlockSpec((1, tb), lambda i: (0, i))      # lane-dense (1, TB) blocks

    flops = 2 * padded * (in_dim * HIDDEN + HIDDEN * HIDDEN + HIDDEN)
    transcendentals = 2 * padded * HIDDEN
    bytes_accessed = (
        padded * in_dim * 4 + padded * 4
        + (w1.size + w2.size + w3.size + b1.size + b2.size + b3.size) * 4
    )

    out = pl.pallas_call(
        critic_kernel,
        out_shape=jax.ShapeDtypeStruct((1, padded), jnp.float32),
        grid=(num_tiles,),
        in_specs=in_specs,
        out_specs=out_spec,
        compiler_params=pltpu.CompilerParams(
            dimension_semantics=("parallel",)),             # megacore sharding on v7x
        cost_estimate=pl.CostEstimate(
            flops=flops,
            transcendentals=transcendentals,
            bytes_accessed=bytes_accessed),
    )(xT, w1, b1, w2, b2, w3, b3)

    return out[0, :batch].reshape(batch, 1)


def critic_ref(state, params):
    """Pure-JAX f32 reference matching the PyTorch Critic."""
    h = jnp.tanh(state @ params["w1"].T + params["b1"][:, 0])
    h = jnp.tanh(h @ params["w2"].T + params["b2"][:, 0])
    return h @ params["w3"].T + params["b3"]


if __name__ == "__main__":
    key = jax.random.PRNGKey(0)
    k_param, k_state1, k_state2 = jax.random.split(key, 3)

    in_dim = 24  # BipedalWalker observation dim
    params = make_critic_params(in_dim, k_param)

    # Small batch: exercises padding (37 -> 128) and the single-tile path.
    batch = 37
    state = jax.random.normal(k_state1, (batch, in_dim), dtype=jnp.float32)
    value = critic_forward(state, params)
    jax.block_until_ready(value)
    expected = critic_ref(state, params)
    assert value.shape == (batch, 1)
    assert jnp.allclose(value, expected, atol=1e-4, rtol=1e-4), float(
        jnp.max(jnp.abs(value - expected)))

    # Slightly larger batch: exercises the multi-tile (2-tile) parallel grid path.
    batch2 = 300
    state2 = jax.random.normal(k_state2, (batch2, in_dim), dtype=jnp.float32)
    value2 = critic_forward(state2, params)
    jax.block_until_ready(value2)
    expected2 = critic_ref(state2, params)
    assert value2.shape == (batch2, 1)
    assert jnp.allclose(value2, expected2, atol=1e-4, rtol=1e-4), float(
        jnp.max(jnp.abs(value2 - expected2)))

    print("KERNEL_OK")
</pallas_src>

<mosaic_0001>
module attributes {stable_mosaic.version = 11 : i64} {
  func.func @critic_kernel(%arg0: i32, %arg1: memref<24x128xf32, #tpu.memory_space<vmem>>, %arg2: memref<64x24xf32, #tpu.memory_space<vmem>>, %arg3: memref<64x1xf32, #tpu.memory_space<vmem>>, %arg4: memref<64x64xf32, #tpu.memory_space<vmem>>, %arg5: memref<64x1xf32, #tpu.memory_space<vmem>>, %arg6: memref<1x64xf32, #tpu.memory_space<vmem>>, %arg7: memref<1xf32, #tpu.memory_space<smem>>, %arg8: memref<1x128xf32, #tpu.memory_space<vmem>>) attributes {dimension_semantics = [#tpu.dimension_semantics<parallel>], iteration_bounds = array<i64: 1>, scalar_prefetch = 0 : i64, scratch_operands = 0 : i64, tpu.core_type = #tpu.core_type<tc>, window_params = [{transform_indices = @transform_0, window_bounds = array<i64: 24, 128>}, {pipeline_mode = #tpu.pipeline_mode<synchronous>, transform_indices = @transform_1, window_bounds = array<i64: 64, 24>}, {pipeline_mode = #tpu.pipeline_mode<synchronous>, transform_indices = @transform_2, window_bounds = array<i64: 64, 1>}, {pipeline_mode = #tpu.pipeline_mode<synchronous>, transform_indices = @transform_3, window_bounds = array<i64: 64, 64>}, {pipeline_mode = #tpu.pipeline_mode<synchronous>, transform_indices = @transform_4, window_bounds = array<i64: 64, 1>}, {pipeline_mode = #tpu.pipeline_mode<synchronous>, transform_indices = @transform_5, window_bounds = array<i64: 1, 64>}, {transform_indices = @transform_6, window_bounds = array<i64: 1>}, {transform_indices = @transform_7, window_bounds = array<i64: 1, 128>}]} {
    %c0 = arith.constant 0 : index
    %c0_0 = arith.constant 0 : index
    %0 = vector.load %arg2[%c0, %c0_0] : memref<64x24xf32, #tpu.memory_space<vmem>>, vector<64x24xf32>
    %c0_1 = arith.constant 0 : index
    %c0_2 = arith.constant 0 : index
    %1 = vector.load %arg1[%c0_1, %c0_2] : memref<24x128xf32, #tpu.memory_space<vmem>>, vector<24x128xf32>
    %cst = arith.constant dense<0.000000e+00> : vector<64x128xf32>
    %2 = tpu.matmul %0, %1, %cst {dimension_numbers = #tpu.dot_dimension_numbers<[1], [0], [0], [1], [0, 0, 1, 1], [], []>} : vector<64x24xf32>, vector<24x128xf32>, vector<64x128xf32> -> vector<64x128xf32>
    %c0_3 = arith.constant 0 : index
    %c0_4 = arith.constant 0 : index
    %3 = vector.load %arg3[%c0_3, %c0_4] : memref<64x1xf32, #tpu.memory_space<vmem>>, vector<64x1xf32>
    %4 = vector.broadcast %3 : vector<64x1xf32> to vector<64x128xf32>
    %5 = arith.addf %2, %4 : vector<64x128xf32>
    %6 = math.tanh %5 : vector<64x128xf32>
    %c0_5 = arith.constant 0 : index
    %c0_6 = arith.constant 0 : index
    %7 = vector.load %arg4[%c0_5, %c0_6] : memref<64x64xf32, #tpu.memory_space<vmem>>, vector<64x64xf32>
    %cst_7 = arith.constant dense<0.000000e+00> : vector<64x128xf32>
    %8 = tpu.matmul %7, %6, %cst_7 {dimension_numbers = #tpu.dot_dimension_numbers<[1], [0], [0], [1], [0, 0, 1, 1], [], []>} : vector<64x64xf32>, vector<64x128xf32>, vector<64x128xf32> -> vector<64x128xf32>
    %c0_8 = arith.constant 0 : index
    %c0_9 = arith.constant 0 : index
    %9 = vector.load %arg5[%c0_8, %c0_9] : memref<64x1xf32, #tpu.memory_space<vmem>>, vector<64x1xf32>
    %10 = vector.broadcast %9 : vector<64x1xf32> to vector<64x128xf32>
    %11 = arith.addf %8, %10 : vector<64x128xf32>
    %12 = math.tanh %11 : vector<64x128xf32>
    %c0_10 = arith.constant 0 : index
    %c0_11 = arith.constant 0 : index
    %13 = vector.load %arg6[%c0_10, %c0_11] : memref<1x64xf32, #tpu.memory_space<vmem>>, vector<1x64xf32>
    %cst_12 = arith.constant dense<0.000000e+00> : vector<1x128xf32>
    %14 = tpu.matmul %13, %12, %cst_12 {dimension_numbers = #tpu.dot_dimension_numbers<[1], [0], [0], [1], [0, 0, 1, 1], [], []>} : vector<1x64xf32>, vector<64x128xf32>, vector<1x128xf32> -> vector<1x128xf32>
    %c0_13 = arith.constant 0 : index
    %15 = memref.load %arg7[%c0_13] : memref<1xf32, #tpu.memory_space<smem>>
    %16 = vector.broadcast %15 : f32 to vector<1x128xf32>
    %17 = arith.addf %14, %16 : vector<1x128xf32>
    %c0_14 = arith.constant 0 : index
    %c0_15 = arith.constant 0 : index
    %18 = vector.load %arg8[%c0_14, %c0_15] : memref<1x128xf32, #tpu.memory_space<vmem>>, vector<1x128xf32>
    tpu.vector_store %arg8[%c0_14, %c0_15], %17 {strides = array<i32>} : memref<1x128xf32, #tpu.memory_space<vmem>>, vector<1x128xf32>,
    return
  }
  func.func @transform_0(%arg0: i32) -> (i32, i32) {
    %c0_i32 = arith.constant 0 : i32
    %c0_i32_0 = arith.constant 0 : i32
    return %c0_i32, %arg0 : i32, i32
  }
  func.func @transform_1(%arg0: i32) -> (i32, i32) {
    %c0_i32 = arith.constant 0 : i32
    %c0_i32_0 = arith.constant 0 : i32
    %c0_i32_1 = arith.constant 0 : i32
    return %c0_i32, %c0_i32_0 : i32, i32
  }
  func.func @transform_2(%arg0: i32) -> (i32, i32) {
    %c0_i32 = arith.constant 0 : i32
    %c0_i32_0 = arith.constant 0 : i32
    %c0_i32_1 = arith.constant 0 : i32
    return %c0_i32, %c0_i32_0 : i32, i32
  }
  func.func @transform_3(%arg0: i32) -> (i32, i32) {
    %c0_i32 = arith.constant 0 : i32
    %c0_i32_0 = arith.constant 0 : i32
    %c0_i32_1 = arith.constant 0 : i32
    return %c0_i32, %c0_i32_0 : i32, i32
  }
  func.func @transform_4(%arg0: i32) -> (i32, i32) {
    %c0_i32 = arith.constant 0 : i32
    %c0_i32_0 = arith.constant 0 : i32
    %c0_i32_1 = arith.constant 0 : i32
    return %c0_i32, %c0_i32_0 : i32, i32
  }
  func.func @transform_5(%arg0: i32) -> (i32, i32) {
    %c0_i32 = arith.constant 0 : i32
    %c0_i32_0 = arith.constant 0 : i32
    %c0_i32_1 = arith.constant 0 : i32
    return %c0_i32, %c0_i32_0 : i32, i32
  }
  func.func @transform_6(%arg0: i32) -> i32 {
    %c0_i32 = arith.constant 0 : i32
    %c0_i32_0 = arith.constant 0 : i32
    return %c0_i32 : i32
  }
  func.func @transform_7(%arg0: i32) -> (i32, i32) {
    %c0_i32 = arith.constant 0 : i32
    %c0_i32_0 = arith.constant 0 : i32
    return %c0_i32, %arg0 : i32, i32
  }
}

</mosaic_0001>

<bundles_post_ra>
// kernel: tpu_custom_call.1
= control target key start
LH: loop header
LB: loop body
LE: loop exit
PB: predicated region body
PF: predicated region fallthrough
CT: control target
= control target key end

     0   :  { %vm87_vm0 = vcmask 195584   ;;  %v688_v3 = vmov 0   ;;  %s863_s0 = inlined_call_operand.vmem [shape: f32[24,128], index: 0, kind: input, shape index: {}]   ;;  %s864_s1 = inlined_call_operand.vmem [shape: f32[64,24], index: 1, kind: input, shape index: {}]   ;;  %s865_s2 = inlined_call_operand.vmem [shape: f32[64,1], index: 2, kind: input, shape index: {}]   ;;  %s866_s3 = inlined_call_operand.vmem [shape: f32[64,64], index: 3, kind: input, shape index: {}]   ;;  %s867_s4 = inlined_call_operand.vmem [shape: f32[64,1], index: 4, kind: input, shape index: {}]   ;;  %s868_s5 = inlined_call_operand.vmem [shape: f32[1,64], index: 5, kind: input, shape index: {}]   ;;  %s869_s6 = inlined_call_operand.<no memory space> [shape: f32[1], index: 6, kind: input, shape index: {}]   ;;  %s870_s7 = inlined_call_operand.hbm [shape: f32[1,128], index: 7, kind: output, shape index: {}]  }
   0x1   :  { %v38_v0 = vld [vmem:[%s863_s0 + $0x10] sm:$0xff]  ;;  %v37_v1 = vld [vmem:[%s863_s0 + $0x8] sm:$0xff]  ;;  %v28_v2 = vld [vmem:[%s864_s1] sm:$0xff]  ;;  %632 = vset.pattern.permute.xlu0 %v688_v3  ;;  %633 = vset.pattern.permute.xlu1 %v688_v3 }
   0x2   :  { %563 = vmatprep.subr.mxu0 %v38_v0  ;;  %v36_v4 = vld [vmem:[%s863_s0] sm:$0xff]  ;;  %569 = vmatprep.mubr.msk.f32.mxu0 %vm87_vm0, %v28_v2  ;;  %v46_v5 = vld [vmem:[%s865_s2 + $0x38] sm:$0xff]  ;;  %v29_v6 = vld [vmem:[%s864_s1 + $0x8] sm:$0xff] }
   0x3   :  { %564 = vmatpush3.msra.mxu0 %v38_v0  ;;  %84 = vperm.xlu0 %632, %v46_v5   ;;  %v44_v7 = vld [vmem:[%s865_s2 + $0x28] sm:$0xff]  ;;  %v30_v8 = vld [vmem:[%s864_s1 + $0x10] sm:$0xff]  ;;  %v43_v10 = vld [vmem:[%s865_s2 + $0x20] sm:$0xff] }
   0x4   :  { %565 = vmatprep.subr.mxu0 %v37_v1  ;;  %v45_v9 = vld [vmem:[%s865_s2 + $0x30] sm:$0xff]  ;;  %74 = vperm.xlu1 %633, %v44_v7   ;;  %v31_v11 = vld [vmem:[%s864_s1 + $0x18] sm:$0xff]  ;;  %v32_v12 = vld [vmem:[%s864_s1 + $0x20] sm:$0xff] }
   0x5   :  { %566 = vmatpush3.msra.mxu0 %v37_v1  ;;  %v42_v13 = vld [vmem:[%s865_s2 + $0x18] sm:$0xff] }
   0x6   :  { %567 = vmatprep.subr.mxu0 %v36_v4 }
   0x7   :  { %568 = vmatpush3.msra.mxu0 %v36_v4  ;;  %79 = vperm.xlu0 %632, %v45_v9  }
   0x8   :  { %570 = vmatmul.mubr.msk.f32.vlgmr.msra.gmra.mxu0 %vm87_vm0, %v29_v6  ;;  %69 = vperm.xlu1 %633, %v43_v10  }
   0x9   :  { %572 = vmatprep.mubr.msk.f32.mxu0 %vm87_vm0, %v30_v8 }
   0xa   :  { %13 = vsyncpa [#allocation4], 0  ;;  %v41_v14 = vld [vmem:[%s865_s2 + $0x10] sm:$0xff]  ;;  %v33_v15 = vld [vmem:[%s864_s1 + $0x28] sm:$0xff]  ;;  %vm281_vm1 = vcmask 523264   ;;  %v689_v4 = vmov 0.0  }
   0xb   :  { %64 = vperm.xlu0 %632, %v42_v13   ;;  %v34_v16 = vld [vmem:[%s864_s1 + $0x30] sm:$0xff]  ;;  %v40_v17 = vld [vmem:[%s865_s2 + $0x8] sm:$0xff]  ;;  %v39_v18 = vld [vmem:[%s865_s2] sm:$0xff]  ;;  %609 = vmatprep.subr.mxu0 %v689_v4  ;;  %vm690_vm2 = vmmov 0   ;;  %s691_s20 = smov [#allocation3]  }
   0xc   :  { %573 = vmatmul.mubr.msk.f32.gmra.mxu0 %vm87_vm0, %v31_v11  ;;  %59 = vperm.xlu1 %633, %v41_v14   ;;  %v35_v19 = vld [vmem:[%s864_s1 + $0x38] sm:$0xff]  ;;  %v239_v21 = vld [vmem:[%s867_s4 + $0x30] sm:$0xff]  ;;  %v238_v22 = vld [vmem:[%s867_s4 + $0x28] sm:$0xff]  ;;  %s502_s21 = sshll.u32 %s691_s20, 4  ;;  %s503_s21 = int_to_ptr.vmem [resolvable:$true] %s502_s21 }
   0xd   :  { %575 = vmatprep.mubr.msk.f32.mxu0 %vm87_vm0, %v32_v12  ;;  %v240_v20 = vld [vmem:[%s867_s4 + $0x38] sm:$0xff]  ;;  %v237_v23 = vld [vmem:[%s867_s4 + $0x20] sm:$0xff]  ;;  %v235_v25 = vld [vmem:[%s867_s4 + $0x10] sm:$0xff]  ;;  %s666_s22 = scalar_lea.vmem %s503_s21, 16  ;;  %s670_s23 = scalar_lea.vmem %s503_s21, 32 }
   0xe   :  { %v236_v24 = vld [vmem:[%s867_s4 + $0x18] sm:$0xff]  ;;  %v234_v26 = vld [vmem:[%s867_s4 + $0x8] sm:$0xff]  ;;  %v233_v27 = vld [vmem:[%s867_s4] sm:$0xff]  ;;  %p667_p0 = scmp.ne.s32.totalorder %s503_s21, %s666_s22  ;;  %p671_p1 = scmp.lt.s32.totalorder %s503_s21, %s503_s21 }
   0xf   :  { %54 = vperm.xlu0 %632, %v40_v17   ;;  %v225_v28 = vld [vmem:[%s866_s3] sm:$0xff]  ;;  %v226_v61 = vld [vmem:[%s866_s3 + $0x8] sm:$0xff]  ;;  %v227_v62 = vld [vmem:[%s866_s3 + $0x10] sm:$0xff]  ;;  %p672_p2 = scmp.lt.s32.totalorder %s670_s23, %s666_s22 }
  0x10   :  { %576 = vmatmul.mubr.msk.f32.gmra.mxu0 %vm87_vm0, %v33_v15  ;;  %49 = vperm.xlu1 %633, %v39_v18   ;;  %v228_v63 = vld [vmem:[%s866_s3 + $0x18] sm:$0xff]  ;;  %v229_v0 = vld [vmem:[%s866_s3 + $0x20] sm:$0xff]  ;;  %v230_v1 = vld [vmem:[%s866_s3 + $0x28] sm:$0xff] }
  0x11   :  { %578 = vmatprep.mubr.msk.f32.mxu0 %vm87_vm0, %v34_v16  ;;  %597 = vmatprep.mubr.msk.f32.mxu1 %vm281_vm1, %v225_v28  ;;  %v231_v2 = vld [vmem:[%s866_s3 + $0x30] sm:$0xff]  ;;  %v232_v3 = vld [vmem:[%s866_s3 + $0x38] sm:$0xff]  ;;  %p673_p3 = por %p672_p2, %p671_p1 }
  0x13   :  { %278 = vperm.xlu0 %632, %v240_v20   ;;  %p674_p4 = pnand %p673_p3, %p667_p0 }
  0x14   :  { %579 = vmatmul.mubr.msk.f32.gmra.mxu0 %vm87_vm0, %v35_v19  ;;  %273 = vperm.xlu1 %633, %v239_v21  }
  0x15   :  { %625 = vmatprep.mubr.msk.f32.mxu0 %vm690_vm2, %v689_v4 }
  0x17   :  { %268 = vperm.xlu0 %632, %v238_v22  }
  0x18   :  { %263 = vperm.xlu1 %633, %v237_v23  }
  0x1b   :  { %258 = vperm.xlu0 %632, %v236_v24  }
  0x1c   :  { %253 = vperm.xlu1 %633, %v235_v25  }
  0x1f   :  { %248 = vperm.xlu0 %632, %v234_v26  }
  0x20   :  { %243 = vperm.xlu1 %633, %v233_v27  }
  0x7e   :  { %v85_v31 = vpop.permute.xlu0 %84 }
  0x7f   :  { %v75_v33 = vpop.permute.xlu1 %74 }
  0x82   :  { %v80_v36 = vpop.permute.xlu0 %79 }
  0x83   :  { %v70_v38 = vpop.permute.xlu1 %69 }
  0x86   :  { %v65_v44 = vpop.permute.xlu0 %64 }
  0x87   :  { %v60_v46 = vpop.permute.xlu1 %59 }
  0x8a   :  { %v55_v49 = vpop.permute.xlu0 %54 }
  0x8b   :  { %v50_v51 = vpop.permute.xlu1 %49 }
  0x8e   :  { %v279_v7 = vpop.permute.xlu0 %278 }
  0x8f   :  { %v274_v9 = vpop.permute.xlu1 %273 }
  0x92   :  { %v269_v12 = vpop.permute.xlu0 %268 }
  0x93   :  { %v264_v14 = vpop.permute.xlu1 %263 }
  0x96   :  { %v259_v20 = vpop.permute.xlu0 %258 }
  0x97   :  { %v254_v22 = vpop.permute.xlu1 %253 }
  0x9a   :  { %v249_v25 = vpop.permute.xlu0 %248 }
  0x9b   :  { %v244_v27 = vpop.permute.xlu1 %243 }
  0xc8   :  { %v571_v29 = vpop.f32.mrf.mxu0 }
  0xc9   :  { %v184_v50 = vadd.f32 %v571_v29, %v55_v49 }
  0xca   :  { %v178_v30 = vpop.f32.mrf.mxu0 }
  0xcb   :  { %v179_v52 = vadd.f32 %v178_v30, %v50_v51 }
  0xcc   :  { %v574_v32 = vpop.f32.mrf.mxu0 }
  0xcd   :  { %v194_v47 = vadd.f32 %v574_v32, %v65_v44 }
  0xce   :  { %v188_v34 = vpop.f32.mrf.mxu0 }
  0xcf   :  { %v189_v48 = vadd.f32 %v188_v34, %v60_v46 }
  0xd0   :  { %v577_v35 = vpop.f32.mrf.mxu0 }
  0xd1   :  { %v204_v42 = vadd.f32 %v577_v35, %v75_v33 }
  0xd2   :  { %v198_v37 = vpop.f32.mrf.mxu0 }
  0xd3   :  { %v199_v45 = vadd.f32 %v198_v37, %v70_v38  ;;  %v421_v38 = vstv %s869_s6 }
  0xd4   :  { %v580_v39 = vpop.f32.mrf.mxu0 }
  0xd5   :  { %v214_v40 = vadd.f32 %v580_v39, %v85_v31 }
  0xd6   :  { %v208_v41 = vpop.f32.mrf.mxu0 }
  0xd7   :  { %634 = vtanh.f32 %v214_v40  ;;  %v209_v43 = vadd.f32 %v208_v41, %v80_v36  ;;  %v419_v36 = vld [vmem:[%s868_s5] sm:$0x1] }
  0xd9   :  { %636 = vtanh.f32 %v209_v43 }
  0xda   :  { %638 = vtanh.f32 %v204_v42 }
  0xdb   :  { %640 = vtanh.f32 %v199_v45 }
  0xdc   :  { %642 = vtanh.f32 %v194_v47 }
  0xdd   :  { %644 = vtanh.f32 %v189_v48 }
  0xde   :  { %646 = vtanh.f32 %v184_v50 }
  0xdf   :  { %648 = vtanh.f32 %v179_v52 }
  0xe4   :  { %v635_v53 = vpop.eup %634 }
  0xe5   :  { %581 = vmatprep.subr.mxu1 %v635_v53 }
  0xe6   :  { %v637_v54 = vpop.eup %636  ;;  %582 = vmatpush3.msra.mxu1 %v635_v53 }
  0xe7   :  { %583 = vmatprep.subr.mxu1 %v637_v54  ;;  %v639_v55 = vpop.eup %638 }
  0xe8   :  { %584 = vmatpush3.msra.mxu1 %v637_v54  ;;  %v641_v56 = vpop.eup %640 }
  0xe9   :  { %585 = vmatprep.subr.mxu1 %v639_v55  ;;  %v643_v57 = vpop.eup %642 }
  0xea   :  { %586 = vmatpush3.msra.mxu1 %v639_v55  ;;  %v645_v58 = vpop.eup %644 }
  0xeb   :  { %587 = vmatprep.subr.mxu1 %v641_v56  ;;  %v647_v59 = vpop.eup %646 }
  0xec   :  { %588 = vmatpush3.msra.mxu1 %v641_v56  ;;  %v649_v60 = vpop.eup %648 }
  0xed   :  { %589 = vmatprep.subr.mxu1 %v643_v57 }
  0xee   :  { %590 = vmatpush3.msra.mxu1 %v643_v57 }
  0xef   :  { %591 = vmatprep.subr.mxu1 %v645_v58 }
  0xf0   :  { %592 = vmatpush3.msra.mxu1 %v645_v58 }
  0xf1   :  { %593 = vmatprep.subr.mxu1 %v647_v59 }
  0xf2   :  { %594 = vmatpush3.msra.mxu1 %v647_v59 }
  0xf3   :  { %595 = vmatprep.subr.mxu1 %v649_v60 }
  0xf4   :  { %596 = vmatpush3.msra.mxu1 %v649_v60 }
  0xf5   :  { %598 = vmatmul.mubr.msk.f32.vlgmr.msra.gmra.mxu1 %vm281_vm1, %v226_v61 }
  0xf6   :  { %600 = vmatprep.mubr.msk.f32.mxu1 %vm281_vm1, %v227_v62 }
  0xf9   :  { %601 = vmatmul.mubr.msk.f32.gmra.mxu1 %vm281_vm1, %v228_v63 }
  0xfa   :  { %603 = vmatprep.mubr.msk.f32.mxu1 %vm281_vm1, %v229_v0 }
  0xfd   :  { %604 = vmatmul.mubr.msk.f32.gmra.mxu1 %vm281_vm1, %v230_v1 }
  0xfe   :  { %606 = vmatprep.mubr.msk.f32.mxu1 %vm281_vm1, %v231_v2 }
 0x101   :  { %607 = vmatmul.mubr.msk.f32.gmra.mxu1 %vm281_vm1, %v232_v3 }
 0x1b5   :  { %v599_v5 = vpop.f32.mrf.mxu1 }
 0x1b6   :  { %v378_v26 = vadd.f32 %v599_v5, %v249_v25 }
 0x1b7   :  { %v372_v6 = vpop.f32.mrf.mxu1 }
 0x1b8   :  { %v373_v28 = vadd.f32 %v372_v6, %v244_v27 }
 0x1b9   :  { %v602_v8 = vpop.f32.mrf.mxu1 }
 0x1ba   :  { %v388_v23 = vadd.f32 %v602_v8, %v259_v20 }
 0x1bb   :  { %v382_v10 = vpop.f32.mrf.mxu1 }
 0x1bc   :  { %v383_v24 = vadd.f32 %v382_v10, %v254_v22 }
 0x1bd   :  { %v605_v11 = vpop.f32.mrf.mxu1 }
 0x1be   :  { %v398_v18 = vadd.f32 %v605_v11, %v269_v12 }
 0x1bf   :  { %v392_v13 = vpop.f32.mrf.mxu1 }
 0x1c0   :  { %v393_v21 = vadd.f32 %v392_v13, %v264_v14 }
 0x1c1   :  { %v608_v15 = vpop.f32.mrf.mxu1 }
 0x1c2   :  { %v408_v16 = vadd.f32 %v608_v15, %v279_v7 }
 0x1c3   :  { %v402_v17 = vpop.f32.mrf.mxu1 }
 0x1c4   :  { %650 = vtanh.f32 %v408_v16  ;;  %v403_v19 = vadd.f32 %v402_v17, %v274_v9 }
 0x1c6   :  { %652 = vtanh.f32 %v403_v19 }
 0x1c7   :  { %654 = vtanh.f32 %v398_v18 }
 0x1c8   :  { %656 = vtanh.f32 %v393_v21 }
 0x1c9   :  { %658 = vtanh.f32 %v388_v23 }
 0x1ca   :  { %660 = vtanh.f32 %v383_v24 }
 0x1cb   :  { %662 = vtanh.f32 %v378_v26 }
 0x1cc   :  { %664 = vtanh.f32 %v373_v28 }
 0x1d1   :  { %v651_v29 = vpop.eup %650 }
 0x1d2   :  { %610 = vmatpush3.msra.mxu0 %v651_v29 }
 0x1d3   :  { %v653_v30 = vpop.eup %652  ;;  %611 = vmatprep.subr.mxu0 %v689_v4 }
 0x1d4   :  { %612 = vmatpush3.msra.mxu0 %v653_v30  ;;  %v655_v31 = vpop.eup %654 }
 0x1d5   :  { %613 = vmatprep.subr.mxu0 %v689_v4  ;;  %v657_v32 = vpop.eup %656 }
 0x1d6   :  { %614 = vmatpush3.msra.mxu0 %v655_v31  ;;  %v659_v33 = vpop.eup %658 }
 0x1d7   :  { %615 = vmatprep.subr.mxu0 %v689_v4  ;;  %v661_v34 = vpop.eup %660 }
 0x1d8   :  { %616 = vmatpush3.msra.mxu0 %v657_v32  ;;  %v663_v35 = vpop.eup %662 }
 0x1d9   :  { %617 = vmatprep.subr.mxu0 %v689_v4  ;;  %v665_v37 = vpop.eup %664 }
 0x1da   :  { %618 = vmatpush3.msra.mxu0 %v659_v33 }
 0x1db   :  { %619 = vmatprep.subr.mxu0 %v689_v4 }
 0x1dc   :  { %620 = vmatpush3.msra.mxu0 %v661_v34 }
 0x1dd   :  { %621 = vmatprep.subr.mxu0 %v689_v4 }
 0x1de   :  { %622 = vmatpush3.msra.mxu0 %v663_v35 }
 0x1df   :  { %623 = vmatprep.subr.mxu0 %v689_v4 }
 0x1e0   :  { %624 = vmatpush3.msra.mxu0 %v665_v37 }
 0x1e1   :  { %626 = vmatmul.mubr.msk.f32.vlgmr.msra.gmra.mxu0 %vm281_vm1, %v419_v36 }
 0x2a1   :  { %v491_v39 = vpop.f32.mrf.mxu0 }
 0x2a2   :  { %v492_v40 = vadd.f32 %v491_v39, %v421_v38 }
 0x2a3   :  { %v627_v41 = vpop.f32.mrf.mxu0 }
 0x2a4   :  { %495 = vst [vmem:[#allocation3] sm:$0x1] %v492_v40 }
 0x2a5   :  { %677 = shalt.err (!%p674_p4)
}
 0x2a6   :  { %505 = dma.vmem_to_hbm [thread:$0]  %s503_s21, 16, %s870_s7, [#allocation4]  }
 0x2a7   :  { %686 = dma.done.wait [#allocation4], 16  }
 0x2a8   :  { %687 = vsyncadd [#allocation4], 4294967280 }
 0x2a9   :  { %509 = vsyncpa [#allocation4], 1 }

</bundles_post_ra>
